<compile_context>
chip_gen: v7x
topology: tpu7x:2x2x1
jax: 0.10.0
libtpu: 0.0.40
codegen_flags: <defaults>
</compile_context>

<pallas_src>
import functools

import jax
import jax.numpy as jnp
import numpy as np
from jax.experimental import pallas as pl
from jax.experimental.pallas import tpu as pltpu


def _mha_kernel(emb_ref, k_ref, v_ref,
                wq_ref, bq_ref, wk_ref, bk_ref, wv_ref, bv_ref,
                wf_ref, bf_ref,
                o_ref,
                *, h, d_k, d_v, masking):
    """Single-invocation fused multi-head encoder-decoder attention."""
    emb = emb_ref[...]          # [Sq, d_model] (native dtype, fed straight to MXU)
    kin = k_ref[...]            # [Sk, d_model]
    vin = v_ref[...]            # [Sk, d_model]

    # Fused projections: one wide matmul per input covers all heads at once.
    q_all = jnp.dot(emb, wq_ref[...], preferred_element_type=jnp.float32) + bq_ref[...]  # [Sq, h*d_k]
    k_all = jnp.dot(kin, wk_ref[...], preferred_element_type=jnp.float32) + bk_ref[...]  # [Sk, h*d_k]
    v_all = jnp.dot(vin, wv_ref[...], preferred_element_type=jnp.float32) + bv_ref[...]  # [Sk, h*d_v]

    scale = 1.0 / np.sqrt(d_k)
    heads = []
    for i in range(h):  # static (trace-time) unrolled loop; h is small
        q = q_all[:, i * d_k:(i + 1) * d_k]   # [Sq, d_k]
        k = k_all[:, i * d_k:(i + 1) * d_k]   # [Sk, d_k]
        v = v_all[:, i * d_v:(i + 1) * d_v]   # [Sk, d_v]

        # q @ k^T without materializing a transpose: contract dim 1 with dim 1.
        scores = jax.lax.dot_general(
            q, k, (((1,), (1,)), ((), ())),
            preferred_element_type=jnp.float32) * scale                      # [Sq, Sk]

        if masking:  # static python bool -> trace-time branch
            sq, sk = scores.shape
            row = jax.lax.broadcasted_iota(jnp.int32, (sq, sk), 0)
            col = jax.lax.broadcasted_iota(jnp.int32, (sq, sk), 1)
            # Finite sentinel instead of -inf: avoids exp(-inf - -inf) = NaN
            # if a row ever ends up fully masked.
            scores = jnp.where(col <= row, scores, jnp.finfo(jnp.float32).min)

        m = jnp.max(scores, axis=-1, keepdims=True)
        p = jnp.exp(scores - m)
        inv_denom = pl.reciprocal(jnp.sum(p, axis=-1, keepdims=True), approx=True)
        attn = p * inv_denom

        heads.append(jnp.dot(attn, v, preferred_element_type=jnp.float32))   # [Sq, d_v]

    # concat(heads) @ W_final + b_final as ONE matmul (contraction depth h*d_v).
    concat = jnp.concatenate(heads, axis=-1)                                 # [Sq, h*d_v]
    out = jnp.dot(concat, wf_ref[...], preferred_element_type=jnp.float32) + bf_ref[...]
    o_ref[...] = out.astype(o_ref.dtype)


def encoder_decoder_attention(embeddings, K, V, params, *, h, d_k, d_v, masking=False):
    wq, bq = params["wq"], params["bq"]
    wk, bk = params["wk"], params["bk"]
    wv, bv = params["wv"], params["bv"]
    wf, bf = params["wf"], params["bf"]

    Sq, d_model = embeddings.shape

    kernel = functools.partial(_mha_kernel, h=h, d_k=d_k, d_v=d_v, masking=masking)

    vmem_spec = pl.BlockSpec(memory_space=pltpu.MemorySpace.VMEM)

    return pl.pallas_call(
        kernel,
        out_shape=jax.ShapeDtypeStruct((Sq, d_model), embeddings.dtype),
        in_specs=[vmem_spec] * 11,     # everything fully resident; no grid, no per-step DMA
        out_specs=vmem_spec,
    )(embeddings, K, V, wq, bq, wk, bk, wv, bv, wf, bf)


def init_params(key, d_model, h, d_k, d_v):
    """Deterministic init mimicking torch.nn.Linear's default uniform(+-1/sqrt(fan_in)).

    Per-head projection weights are stored stacked along the output dim
    (Wq_all = [d_model, h*d_k], head i occupies columns [i*d_k, (i+1)*d_k)),
    already transposed relative to torch.nn.Linear's [out, in] so the kernel
    computes x @ W + b.  W_final is [h*d_v, d_model].
    """
    keys = jax.random.split(key, 8)

    def lin(k, fan_in, shape):
        bound = 1.0 / np.sqrt(fan_in)
        return jax.random.uniform(k, shape, jnp.float32, -bound, bound)

    return dict(
        wq=lin(keys[0], d_model, (d_model, h * d_k)),
        bq=lin(keys[1], d_model, (1, h * d_k)),
        wk=lin(keys[2], d_model, (d_model, h * d_k)),
        bk=lin(keys[3], d_model, (1, h * d_k)),
        wv=lin(keys[4], d_model, (d_model, h * d_v)),
        bv=lin(keys[5], d_model, (1, h * d_v)),
        wf=lin(keys[6], h * d_v, (h * d_v, d_model)),
        bf=lin(keys[7], h * d_v, (1, d_model)),
    )


def reference(emb, K, V, params, *, h, d_k, d_v, masking=False):
    """Pure-JAX reference matching the PyTorch forward semantics."""
    heads = []
    for i in range(h):
        wq = params["wq"][:, i * d_k:(i + 1) * d_k]
        bq = params["bq"][0, i * d_k:(i + 1) * d_k]
        wk = params["wk"][:, i * d_k:(i + 1) * d_k]
        bk = params["bk"][0, i * d_k:(i + 1) * d_k]
        wv = params["wv"][:, i * d_v:(i + 1) * d_v]
        bv = params["bv"][0, i * d_v:(i + 1) * d_v]

        q = emb @ wq + bq
        k = K @ wk + bk
        v = V @ wv + bv
        s = (q @ k.T) / np.sqrt(d_k)
        if masking:
            sq, sk = s.shape
            s = jnp.where(np.tril(np.ones((sq, sk), bool)), s, jnp.finfo(jnp.float32).min)
        heads.append(jax.nn.softmax(s, axis=-1) @ v)
    concat = jnp.concatenate(heads, axis=-1)          # torch.cat(results, dim=-1)
    return concat @ params["wf"] + params["bf"][0]    # final_linear_layer


if __name__ == "__main__":
    d_model, h, d_k, d_v = 32, 4, 8, 8
    Sq, Sk = 8, 16

    key = jax.random.PRNGKey(0)
    kp, ke, kk, kv = jax.random.split(key, 4)

    params = init_params(kp, d_model, h, d_k, d_v)
    embeddings = jax.random.normal(ke, (Sq, d_model), jnp.float32)
    K = jax.random.normal(kk, (Sk, d_model), jnp.float32)
    V = jax.random.normal(kv, (Sk, d_model), jnp.float32)

    out = encoder_decoder_attention(embeddings, K, V, params,
                                    h=h, d_k=d_k, d_v=d_v, masking=False)
    out = jax.block_until_ready(out)

    ref = reference(embeddings, K, V, params, h=h, d_k=d_k, d_v=d_v, masking=False)
    # Tolerance loosened slightly to accommodate the EUP approx reciprocal in softmax.
    np.testing.assert_allclose(np.asarray(out), np.asarray(ref), rtol=2e-3, atol=2e-3)

    print("KERNEL_OK")
</pallas_src>

<mosaic_0001>
module attributes {stable_mosaic.version = 11 : i64} {
  func.func @_mha_kernel(%arg0: memref<8x32xf32, #tpu.memory_space<vmem>>, %arg1: memref<16x32xf32, #tpu.memory_space<vmem>>, %arg2: memref<16x32xf32, #tpu.memory_space<vmem>>, %arg3: memref<32x32xf32, #tpu.memory_space<vmem>>, %arg4: memref<1x32xf32, #tpu.memory_space<vmem>>, %arg5: memref<32x32xf32, #tpu.memory_space<vmem>>, %arg6: memref<1x32xf32, #tpu.memory_space<vmem>>, %arg7: memref<32x32xf32, #tpu.memory_space<vmem>>, %arg8: memref<1x32xf32, #tpu.memory_space<vmem>>, %arg9: memref<32x32xf32, #tpu.memory_space<vmem>>, %arg10: memref<1x32xf32, #tpu.memory_space<vmem>>, %arg11: memref<8x32xf32, #tpu.memory_space<vmem>>) attributes {dimension_semantics = [], scalar_prefetch = 0 : i64, scratch_operands = 0 : i64, tpu.core_type = #tpu.core_type<tc>} {
    %c0 = arith.constant 0 : index
    %c0_0 = arith.constant 0 : index
    %0 = vector.load %arg0[%c0, %c0_0] : memref<8x32xf32, #tpu.memory_space<vmem>>, vector<8x32xf32>
    %c0_1 = arith.constant 0 : index
    %c0_2 = arith.constant 0 : index
    %1 = vector.load %arg1[%c0_1, %c0_2] : memref<16x32xf32, #tpu.memory_space<vmem>>, vector<16x32xf32>
    %c0_3 = arith.constant 0 : index
    %c0_4 = arith.constant 0 : index
    %2 = vector.load %arg2[%c0_3, %c0_4] : memref<16x32xf32, #tpu.memory_space<vmem>>, vector<16x32xf32>
    %c0_5 = arith.constant 0 : index
    %c0_6 = arith.constant 0 : index
    %3 = vector.load %arg3[%c0_5, %c0_6] : memref<32x32xf32, #tpu.memory_space<vmem>>, vector<32x32xf32>
    %cst = arith.constant dense<0.000000e+00> : vector<8x32xf32>
    %4 = tpu.matmul %0, %3, %cst {dimension_numbers = #tpu.dot_dimension_numbers<[1], [0], [0], [1], [0, 0, 1, 1], [], []>} : vector<8x32xf32>, vector<32x32xf32>, vector<8x32xf32> -> vector<8x32xf32>
    %c0_7 = arith.constant 0 : index
    %c0_8 = arith.constant 0 : index
    %5 = vector.load %arg4[%c0_7, %c0_8] : memref<1x32xf32, #tpu.memory_space<vmem>>, vector<1x32xf32>
    %6 = vector.broadcast %5 : vector<1x32xf32> to vector<8x32xf32>
    %7 = arith.addf %4, %6 : vector<8x32xf32>
    %c0_9 = arith.constant 0 : index
    %c0_10 = arith.constant 0 : index
    %8 = vector.load %arg5[%c0_9, %c0_10] : memref<32x32xf32, #tpu.memory_space<vmem>>, vector<32x32xf32>
    %cst_11 = arith.constant dense<0.000000e+00> : vector<16x32xf32>
    %9 = tpu.matmul %1, %8, %cst_11 {dimension_numbers = #tpu.dot_dimension_numbers<[1], [0], [0], [1], [0, 0, 1, 1], [], []>} : vector<16x32xf32>, vector<32x32xf32>, vector<16x32xf32> -> vector<16x32xf32>
    %c0_12 = arith.constant 0 : index
    %c0_13 = arith.constant 0 : index
    %10 = vector.load %arg6[%c0_12, %c0_13] : memref<1x32xf32, #tpu.memory_space<vmem>>, vector<1x32xf32>
    %11 = vector.broadcast %10 : vector<1x32xf32> to vector<16x32xf32>
    %12 = arith.addf %9, %11 : vector<16x32xf32>
    %c0_14 = arith.constant 0 : index
    %c0_15 = arith.constant 0 : index
    %13 = vector.load %arg7[%c0_14, %c0_15] : memref<32x32xf32, #tpu.memory_space<vmem>>, vector<32x32xf32>
    %cst_16 = arith.constant dense<0.000000e+00> : vector<16x32xf32>
    %14 = tpu.matmul %2, %13, %cst_16 {dimension_numbers = #tpu.dot_dimension_numbers<[1], [0], [0], [1], [0, 0, 1, 1], [], []>} : vector<16x32xf32>, vector<32x32xf32>, vector<16x32xf32> -> vector<16x32xf32>
    %c0_17 = arith.constant 0 : index
    %c0_18 = arith.constant 0 : index
    %15 = vector.load %arg8[%c0_17, %c0_18] : memref<1x32xf32, #tpu.memory_space<vmem>>, vector<1x32xf32>
    %16 = vector.broadcast %15 : vector<1x32xf32> to vector<16x32xf32>
    %17 = arith.addf %14, %16 : vector<16x32xf32>
    %18 = vector.extract_strided_slice %7 {offsets = [0, 0], sizes = [8, 8], strides = [1, 1]} : vector<8x32xf32> to vector<8x8xf32>
    %19 = vector.extract_strided_slice %12 {offsets = [0, 0], sizes = [16, 8], strides = [1, 1]} : vector<16x32xf32> to vector<16x8xf32>
    %20 = vector.extract_strided_slice %17 {offsets = [0, 0], sizes = [16, 8], strides = [1, 1]} : vector<16x32xf32> to vector<16x8xf32>
    %cst_19 = arith.constant dense<0.000000e+00> : vector<8x16xf32>
    %21 = tpu.matmul %18, %19, %cst_19 {dimension_numbers = #tpu.dot_dimension_numbers<[1], [1], [0], [0], [0, 0, 1, 0], [], []>} : vector<8x8xf32>, vector<16x8xf32>, vector<8x16xf32> -> vector<8x16xf32>
    %cst_20 = arith.constant 0.353553385 : f32
    %22 = vector.broadcast %cst_20 : f32 to vector<8x16xf32>
    %23 = arith.mulf %21, %22 : vector<8x16xf32>
    %cst_21 = arith.constant dense<0xFF800000> : vector<8xf32>
    %24 = vector.multi_reduction <maximumf>, %23, %cst_21 [1] : vector<8x16xf32> to vector<8xf32>
    %25 = vector.shape_cast %24 : vector<8xf32> to vector<8x1xf32>
    %26 = vector.broadcast %25 : vector<8x1xf32> to vector<8x16xf32>
    %27 = arith.subf %23, %26 : vector<8x16xf32>
    %28 = math.exp %27 : vector<8x16xf32>
    %cst_22 = arith.constant dense<0.000000e+00> : vector<8xf32>
    %29 = vector.multi_reduction <add>, %28, %cst_22 [1] : vector<8x16xf32> to vector<8xf32>
    %30 = vector.shape_cast %29 : vector<8xf32> to vector<8x1xf32>
    %31 = tpu.reciprocal %30 {approx = true} : vector<8x1xf32> -> vector<8x1xf32>
    %32 = vector.broadcast %31 : vector<8x1xf32> to vector<8x16xf32>
    %33 = arith.mulf %28, %32 : vector<8x16xf32>
    %cst_23 = arith.constant dense<0.000000e+00> : vector<8x8xf32>
    %34 = tpu.matmul %33, %20, %cst_23 {dimension_numbers = #tpu.dot_dimension_numbers<[1], [0], [0], [1], [0, 0, 1, 1], [], []>} : vector<8x16xf32>, vector<16x8xf32>, vector<8x8xf32> -> vector<8x8xf32>
    %35 = vector.extract_strided_slice %7 {offsets = [0, 8], sizes = [8, 8], strides = [1, 1]} : vector<8x32xf32> to vector<8x8xf32>
    %36 = vector.extract_strided_slice %12 {offsets = [0, 8], sizes = [16, 8], strides = [1, 1]} : vector<16x32xf32> to vector<16x8xf32>
    %37 = vector.extract_strided_slice %17 {offsets = [0, 8], sizes = [16, 8], strides = [1, 1]} : vector<16x32xf32> to vector<16x8xf32>
    %cst_24 = arith.constant dense<0.000000e+00> : vector<8x16xf32>
    %38 = tpu.matmul %35, %36, %cst_24 {dimension_numbers = #tpu.dot_dimension_numbers<[1], [1], [0], [0], [0, 0, 1, 0], [], []>} : vector<8x8xf32>, vector<16x8xf32>, vector<8x16xf32> -> vector<8x16xf32>
    %cst_25 = arith.constant 0.353553385 : f32
    %39 = vector.broadcast %cst_25 : f32 to vector<8x16xf32>
    %40 = arith.mulf %38, %39 : vector<8x16xf32>
    %cst_26 = arith.constant dense<0xFF800000> : vector<8xf32>
    %41 = vector.multi_reduction <maximumf>, %40, %cst_26 [1] : vector<8x16xf32> to vector<8xf32>
    %42 = vector.shape_cast %41 : vector<8xf32> to vector<8x1xf32>
    %43 = vector.broadcast %42 : vector<8x1xf32> to vector<8x16xf32>
    %44 = arith.subf %40, %43 : vector<8x16xf32>
    %45 = math.exp %44 : vector<8x16xf32>
    %cst_27 = arith.constant dense<0.000000e+00> : vector<8xf32>
    %46 = vector.multi_reduction <add>, %45, %cst_27 [1] : vector<8x16xf32> to vector<8xf32>
    %47 = vector.shape_cast %46 : vector<8xf32> to vector<8x1xf32>
    %48 = tpu.reciprocal %47 {approx = true} : vector<8x1xf32> -> vector<8x1xf32>
    %49 = vector.broadcast %48 : vector<8x1xf32> to vector<8x16xf32>
    %50 = arith.mulf %45, %49 : vector<8x16xf32>
    %cst_28 = arith.constant dense<0.000000e+00> : vector<8x8xf32>
    %51 = tpu.matmul %50, %37, %cst_28 {dimension_numbers = #tpu.dot_dimension_numbers<[1], [0], [0], [1], [0, 0, 1, 1], [], []>} : vector<8x16xf32>, vector<16x8xf32>, vector<8x8xf32> -> vector<8x8xf32>
    %52 = vector.extract_strided_slice %7 {offsets = [0, 16], sizes = [8, 8], strides = [1, 1]} : vector<8x32xf32> to vector<8x8xf32>
    %53 = vector.extract_strided_slice %12 {offsets = [0, 16], sizes = [16, 8], strides = [1, 1]} : vector<16x32xf32> to vector<16x8xf32>
    %54 = vector.extract_strided_slice %17 {offsets = [0, 16], sizes = [16, 8], strides = [1, 1]} : vector<16x32xf32> to vector<16x8xf32>
    %cst_29 = arith.constant dense<0.000000e+00> : vector<8x16xf32>
    %55 = tpu.matmul %52, %53, %cst_29 {dimension_numbers = #tpu.dot_dimension_numbers<[1], [1], [0], [0], [0, 0, 1, 0], [], []>} : vector<8x8xf32>, vector<16x8xf32>, vector<8x16xf32> -> vector<8x16xf32>
    %cst_30 = arith.constant 0.353553385 : f32
    %56 = vector.broadcast %cst_30 : f32 to vector<8x16xf32>
    %57 = arith.mulf %55, %56 : vector<8x16xf32>
    %cst_31 = arith.constant dense<0xFF800000> : vector<8xf32>
    %58 = vector.multi_reduction <maximumf>, %57, %cst_31 [1] : vector<8x16xf32> to vector<8xf32>
    %59 = vector.shape_cast %58 : vector<8xf32> to vector<8x1xf32>
    %60 = vector.broadcast %59 : vector<8x1xf32> to vector<8x16xf32>
    %61 = arith.subf %57, %60 : vector<8x16xf32>
    %62 = math.exp %61 : vector<8x16xf32>
    %cst_32 = arith.constant dense<0.000000e+00> : vector<8xf32>
    %63 = vector.multi_reduction <add>, %62, %cst_32 [1] : vector<8x16xf32> to vector<8xf32>
    %64 = vector.shape_cast %63 : vector<8xf32> to vector<8x1xf32>
    %65 = tpu.reciprocal %64 {approx = true} : vector<8x1xf32> -> vector<8x1xf32>
    %66 = vector.broadcast %65 : vector<8x1xf32> to vector<8x16xf32>
    %67 = arith.mulf %62, %66 : vector<8x16xf32>
    %cst_33 = arith.constant dense<0.000000e+00> : vector<8x8xf32>
    %68 = tpu.matmul %67, %54, %cst_33 {dimension_numbers = #tpu.dot_dimension_numbers<[1], [0], [0], [1], [0, 0, 1, 1], [], []>} : vector<8x16xf32>, vector<16x8xf32>, vector<8x8xf32> -> vector<8x8xf32>
    %69 = vector.extract_strided_slice %7 {offsets = [0, 24], sizes = [8, 8], strides = [1, 1]} : vector<8x32xf32> to vector<8x8xf32>
    %70 = vector.extract_strided_slice %12 {offsets = [0, 24], sizes = [16, 8], strides = [1, 1]} : vector<16x32xf32> to vector<16x8xf32>
    %71 = vector.extract_strided_slice %17 {offsets = [0, 24], sizes = [16, 8], strides = [1, 1]} : vector<16x32xf32> to vector<16x8xf32>
    %cst_34 = arith.constant dense<0.000000e+00> : vector<8x16xf32>
    %72 = tpu.matmul %69, %70, %cst_34 {dimension_numbers = #tpu.dot_dimension_numbers<[1], [1], [0], [0], [0, 0, 1, 0], [], []>} : vector<8x8xf32>, vector<16x8xf32>, vector<8x16xf32> -> vector<8x16xf32>
    %cst_35 = arith.constant 0.353553385 : f32
    %73 = vector.broadcast %cst_35 : f32 to vector<8x16xf32>
    %74 = arith.mulf %72, %73 : vector<8x16xf32>
    %cst_36 = arith.constant dense<0xFF800000> : vector<8xf32>
    %75 = vector.multi_reduction <maximumf>, %74, %cst_36 [1] : vector<8x16xf32> to vector<8xf32>
    %76 = vector.shape_cast %75 : vector<8xf32> to vector<8x1xf32>
    %77 = vector.broadcast %76 : vector<8x1xf32> to vector<8x16xf32>
    %78 = arith.subf %74, %77 : vector<8x16xf32>
    %79 = math.exp %78 : vector<8x16xf32>
    %cst_37 = arith.constant dense<0.000000e+00> : vector<8xf32>
    %80 = vector.multi_reduction <add>, %79, %cst_37 [1] : vector<8x16xf32> to vector<8xf32>
    %81 = vector.shape_cast %80 : vector<8xf32> to vector<8x1xf32>
    %82 = tpu.reciprocal %81 {approx = true} : vector<8x1xf32> -> vector<8x1xf32>
    %83 = vector.broadcast %82 : vector<8x1xf32> to vector<8x16xf32>
    %84 = arith.mulf %79, %83 : vector<8x16xf32>
    %cst_38 = arith.constant dense<0.000000e+00> : vector<8x8xf32>
    %85 = tpu.matmul %84, %71, %cst_38 {dimension_numbers = #tpu.dot_dimension_numbers<[1], [0], [0], [1], [0, 0, 1, 1], [], []>} : vector<8x16xf32>, vector<16x8xf32>, vector<8x8xf32> -> vector<8x8xf32>
    %86 = tpu.concatenate %34, %51, %68, %85 in 1 : vector<8x8xf32>, vector<8x8xf32>, vector<8x8xf32>, vector<8x8xf32> -> vector<8x32xf32>
    %c0_39 = arith.constant 0 : index
    %c0_40 = arith.constant 0 : index
    %87 = vector.load %arg9[%c0_39, %c0_40] : memref<32x32xf32, #tpu.memory_space<vmem>>, vector<32x32xf32>
    %cst_41 = arith.constant dense<0.000000e+00> : vector<8x32xf32>
    %88 = tpu.matmul %86, %87, %cst_41 {dimension_numbers = #tpu.dot_dimension_numbers<[1], [0], [0], [1], [0, 0, 1, 1], [], []>} : vector<8x32xf32>, vector<32x32xf32>, vector<8x32xf32> -> vector<8x32xf32>
    %c0_42 = arith.constant 0 : index
    %c0_43 = arith.constant 0 : index
    %89 = vector.load %arg10[%c0_42, %c0_43] : memref<1x32xf32, #tpu.memory_space<vmem>>, vector<1x32xf32>
    %90 = vector.broadcast %89 : vector<1x32xf32> to vector<8x32xf32>
    %91 = arith.addf %88, %90 : vector<8x32xf32>
    %c0_44 = arith.constant 0 : index
    %c0_45 = arith.constant 0 : index
    %92 = vector.load %arg11[%c0_44, %c0_45] : memref<8x32xf32, #tpu.memory_space<vmem>>, vector<8x32xf32>
    tpu.vector_store %arg11[%c0_44, %c0_45], %91 {strides = array<i32>} : memref<8x32xf32, #tpu.memory_space<vmem>>, vector<8x32xf32>,
    return
  }
}

</mosaic_0001>

<bundles_post_ra>
// kernel: tpu_custom_call.1
= control target key start
LH: loop header
LB: loop body
LE: loop exit
PB: predicated region body
PF: predicated region fallthrough
CT: control target
= control target key end

     0   :  { %16 = vsyncpa [#allocation3], 0  ;;  %s1995_s0 = inlined_call_operand.hbm [shape: f32[8,32], index: 0, kind: input, shape index: {}]   ;;  %s1996_s1 = inlined_call_operand.hbm [shape: f32[16,32], index: 1, kind: input, shape index: {}]   ;;  %s1997_s2 = inlined_call_operand.hbm [shape: f32[16,32], index: 2, kind: input, shape index: {}]   ;;  %s1998_s3 = inlined_call_operand.hbm [shape: f32[32,32], index: 3, kind: input, shape index: {}]   ;;  %s1999_s4 = inlined_call_operand.vmem [shape: f32[1,32], index: 4, kind: input, shape index: {}]   ;;  %s2000_s5 = inlined_call_operand.hbm [shape: f32[32,32], index: 5, kind: input, shape index: {}]   ;;  %s2001_s6 = inlined_call_operand.vmem [shape: f32[1,32], index: 6, kind: input, shape index: {}]   ;;  %s2002_s7 = inlined_call_operand.hbm [shape: f32[32,32], index: 7, kind: input, shape index: {}]   ;;  %s2003_s8 = inlined_call_operand.hbm [shape: f32[1,32], index: 8, kind: input, shape index: {}]   ;;  %s2004_s9 = inlined_call_operand.vmem [shape: f32[32,32], index: 9, kind: input, shape index: {}]   ;;  %s2005_s10 = inlined_call_operand.vmem [shape: f32[1,32], index: 10, kind: input, shape index: {}]   ;;  %s2006_s11 = inlined_call_operand.hbm [shape: f32[8,32], index: 11, kind: output, shape index: {}]  }
   0x1   :  { %17 = vsyncpa [#allocation6], 0 }
   0x2   :  { %18 = vsyncpa [#allocation9], 0 }
   0x3   :  { %19 = vsyncpa [#allocation12], 0 }
   0x4   :  { %20 = vsyncpa [#allocation4], 0  ;;  %s1688_s17 = smov [#allocation5]   ;;  %s1502_s21 = scalar_lea.hbm %s1996_s1, 256 }
   0x5   :  { %s36_s18 = sshll.u32 %s1688_s17, 4  ;;  %p1503_p0 = scmp.ne.s32.totalorder %s1996_s1, %s1502_s21  ;;  %s37_s18 = int_to_ptr.vmem [resolvable:$true] %s36_s18 }
   0x6   :  { %p1506_p1 = scmp.lt.u32.totalorder %s1502_s21, %s1996_s1 }
   0x8   :  { %p1508_p2 = pnand %p1506_p1, %p1503_p0 }
   0xa   :  { %1511 = shalt.err (!%p1508_p2)
}
   0xb   :  { %s1512_s26 = scalar_lea.vmem %s37_s18, 256  ;;  %p1517_p4 = scmp.lt.s32.totalorder %s37_s18, %s37_s18 }
   0xc   :  { %p1513_p3 = scmp.ne.s32.totalorder %s37_s18, %s1512_s26  ;;  %p1518_p5 = scmp.lt.s32.totalorder %s1512_s26, %s1512_s26 }
   0xe   :  { %p1519_p6 = por %p1518_p5, %p1517_p4 }
  0x10   :  { %p1520_p7 = pnand %p1519_p6, %p1513_p3 }
  0x12   :  { %1523 = shalt.err (!%p1520_p7)
}
  0x13   :  { %s1689_s27 = smov 128   ;;  %s1690_s28 = smov 8  }
  0x14   :  { %42 = dma.hbm_to_vmem [thread:$0]  %s1996_s1, 256, %s37_s18, [#allocation6], %s1689_s27, %s1689_s27, %s1690_s28  }
  0x15   :  { %s1691_s12 = smov [#allocation8]   ;;  %s1692_s14 = smov [#allocation11]  }
  0x16   :  { %s60_s13 = sshll.u32 %s1691_s12, 4  ;;  %s88_s15 = sshll.u32 %s1692_s14, 4  ;;  %s61_s13 = int_to_ptr.vmem [resolvable:$true] %s60_s13  ;;  %s89_s15 = int_to_ptr.vmem [resolvable:$true] %s88_s15 }
  0x17   :  { %s1524_s19 = scalar_lea.hbm %s1998_s3, 512 }
  0x18   :  { %p1525_p8 = scmp.ne.s32.totalorder %s1998_s3, %s1524_s19  ;;  %p1528_p9 = scmp.lt.u32.totalorder %s1524_s19, %s1998_s3 }
  0x1a   :  { %p1530_p10 = pnand %p1528_p9, %p1525_p8 }
  0x1c   :  { %1533 = shalt.err (!%p1530_p10)
}
  0x1d   :  { %s1534_s1 = scalar_lea.vmem %s61_s13, 512  ;;  %p1539_p12 = scmp.lt.s32.totalorder %s61_s13, %s61_s13 }
  0x1e   :  { %p1535_p11 = scmp.ne.s32.totalorder %s61_s13, %s1534_s1  ;;  %p1540_p13 = scmp.lt.s32.totalorder %s1534_s1, %s1534_s1 }
  0x20   :  { %p1541_p0 = por %p1540_p13, %p1539_p12 }
  0x22   :  { %p1542_p1 = pnand %p1541_p0, %p1535_p11 }
  0x24   :  { %1545 = shalt.err (!%p1542_p1)
}
  0x25   :  { %66 = dma.hbm_to_vmem [thread:$0]  %s1998_s3, 512, %s61_s13, [#allocation9], %s1689_s27, %s1689_s27, %s1690_s28  }
  0x26   :  { %s1546_s29 = scalar_lea.hbm %s2002_s7, 512 }
  0x27   :  { %p1547_p2 = scmp.ne.s32.totalorder %s2002_s7, %s1546_s29  ;;  %p1550_p3 = scmp.lt.u32.totalorder %s1546_s29, %s2002_s7 }
  0x29   :  { %p1552_p4 = pnand %p1550_p3, %p1547_p2 }
  0x2b   :  { %1555 = shalt.err (!%p1552_p4)
}
  0x2c   :  { %s1556_s17 = scalar_lea.vmem %s89_s15, 512  ;;  %p1561_p6 = scmp.lt.s32.totalorder %s89_s15, %s89_s15 }
  0x2d   :  { %p1557_p5 = scmp.ne.s32.totalorder %s89_s15, %s1556_s17  ;;  %p1562_p7 = scmp.lt.s32.totalorder %s1556_s17, %s1556_s17 }
  0x2f   :  { %p1563_p8 = por %p1562_p7, %p1561_p6 }
  0x31   :  { %p1564_p9 = pnand %p1563_p8, %p1557_p5 }
  0x33   :  { %1567 = shalt.err (!%p1564_p9)
}
  0x34   :  { %94 = dma.hbm_to_vmem [thread:$0]  %s2002_s7, 512, %s89_s15, [#allocation12], %s1689_s27, %s1689_s27, %s1690_s28  }
  0x35   :  { %s1693_s19 = smov [#allocation2]   ;;  %s1694_s21 = smov [#allocation7]  }
  0x36   :  { %s27_s20 = sshll.u32 %s1693_s19, 4  ;;  %s48_s22 = sshll.u32 %s1694_s21, 4  ;;  %s28_s20 = int_to_ptr.vmem [resolvable:$true] %s27_s20  ;;  %s49_s22 = int_to_ptr.vmem [resolvable:$true] %s48_s22 }
  0x37   :  { %s1568_s18 = scalar_lea.hbm %s1995_s0, 128 }
  0x38   :  { %p1569_p10 = scmp.ne.s32.totalorder %s1995_s0, %s1568_s18  ;;  %p1572_p11 = scmp.lt.u32.totalorder %s1568_s18, %s1995_s0 }
  0x3a   :  { %p1574_p12 = pnand %p1572_p11, %p1569_p10 }
  0x3c   :  { %1577 = shalt.err (!%p1574_p12)
}
  0x3d   :  { %s1578_s7 = scalar_lea.vmem %s28_s20, 128  ;;  %p1583_p0 = scmp.lt.s32.totalorder %s28_s20, %s28_s20 }
  0x3e   :  { %p1579_p13 = scmp.ne.s32.totalorder %s28_s20, %s1578_s7  ;;  %p1584_p1 = scmp.lt.s32.totalorder %s1578_s7, %s1578_s7 }
  0x40   :  { %p1585_p2 = por %p1584_p1, %p1583_p0 }
  0x42   :  { %p1586_p3 = pnand %p1585_p2, %p1579_p13 }
  0x44   :  { %1589 = shalt.err (!%p1586_p3)
}
  0x45   :  { %30 = dma.hbm_to_vmem [thread:$0]  %s1995_s0, 128, %s28_s20, [#allocation3]  }
  0x46   :  { %s1590_s16 = scalar_lea.hbm %s1997_s2, 256 }
  0x47   :  { %p1591_p4 = scmp.ne.s32.totalorder %s1997_s2, %s1590_s16  ;;  %p1594_p5 = scmp.lt.u32.totalorder %s1590_s16, %s1997_s2 }
  0x49   :  { %p1596_p6 = pnand %p1594_p5, %p1591_p4 }
  0x4b   :  { %1599 = shalt.err (!%p1596_p6)
}
  0x4c   :  { %s1600_s21 = scalar_lea.vmem %s49_s22, 256  ;;  %p1605_p8 = scmp.lt.s32.totalorder %s49_s22, %s49_s22 }
  0x4d   :  { %p1601_p7 = scmp.ne.s32.totalorder %s49_s22, %s1600_s21  ;;  %p1606_p9 = scmp.lt.s32.totalorder %s1600_s21, %s1600_s21 }
  0x4f   :  { %p1607_p10 = por %p1606_p9, %p1605_p8 }
  0x51   :  { %p1608_p11 = pnand %p1607_p10, %p1601_p7 }
  0x53   :  { %1611 = shalt.err (!%p1608_p11)
}
  0x54   :  { %54 = dma.hbm_to_vmem [thread:$0]  %s1997_s2, 256, %s49_s22, [#allocation6], %s1689_s27, %s1689_s27, %s1690_s28  }
  0x55   :  { %s1695_s23 = smov [#allocation10]   ;;  %s1696_s18 = smov [#allocation13]  }
  0x56   :  { %s74_s1 = sshll.u32 %s1695_s23, 4  ;;  %s101_s24 = sshll.u32 %s1696_s18, 4  ;;  %s75_s1 = int_to_ptr.vmem [resolvable:$true] %s74_s1  ;;  %s102_s24 = int_to_ptr.vmem [resolvable:$true] %s101_s24 }
  0x57   :  { %s1612_s29 = scalar_lea.hbm %s2000_s5, 512 }
  0x58   :  { %p1613_p12 = scmp.ne.s32.totalorder %s2000_s5, %s1612_s29  ;;  %p1616_p13 = scmp.lt.u32.totalorder %s1612_s29, %s2000_s5 }
  0x5a   :  { %p1618_p0 = pnand %p1616_p13, %p1613_p12 }
  0x5c   :  { %1621 = shalt.err (!%p1618_p0)
}
  0x5d   :  { %s1622_s2 = scalar_lea.vmem %s75_s1, 512  ;;  %p1627_p2 = scmp.lt.s32.totalorder %s75_s1, %s75_s1 }
  0x5e   :  { %p1623_p1 = scmp.ne.s32.totalorder %s75_s1, %s1622_s2  ;;  %p1628_p3 = scmp.lt.s32.totalorder %s1622_s2, %s1622_s2 }
  0x60   :  { %p1629_p4 = por %p1628_p3, %p1627_p2 }
  0x62   :  { %p1630_p5 = pnand %p1629_p4, %p1623_p1 }
  0x64   :  { %1633 = shalt.err (!%p1630_p5)
}
  0x65   :  { %80 = dma.hbm_to_vmem [thread:$0]  %s2000_s5, 512, %s75_s1, [#allocation9], %s1689_s27, %s1689_s27, %s1690_s28  }
  0x66   :  { %s1634_s3 = scalar_lea.hbm %s2003_s8, 16 }
  0x67   :  { %p1635_p6 = scmp.ne.s32.totalorder %s2003_s8, %s1634_s3  ;;  %p1638_p7 = scmp.lt.u32.totalorder %s1634_s3, %s2003_s8 }
  0x69   :  { %p1640_p8 = pnand %p1638_p7, %p1635_p6 }
  0x6b   :  { %1643 = shalt.err (!%p1640_p8)
}
  0x6c   :  { %s1644_s20 = scalar_lea.vmem %s102_s24, 16  ;;  %s1648_s23 = scalar_lea.vmem %s102_s24, 32 }
  0x6d   :  { %p1645_p9 = scmp.ne.s32.totalorder %s102_s24, %s1644_s20  ;;  %p1649_p10 = scmp.lt.s32.totalorder %s102_s24, %s102_s24 }
  0x6e   :  { %p1650_p11 = scmp.lt.s32.totalorder %s1648_s23, %s1644_s20 }
  0x70   :  { %p1651_p12 = por %p1650_p11, %p1649_p10 }
  0x72   :  { %p1652_p13 = pnand %p1651_p12, %p1645_p9 }
  0x74   :  { %1655 = shalt.err (!%p1652_p13)
}
  0x75   :  { %104 = dma.hbm_to_vmem [thread:$0]  %s2003_s8, 16, %s102_s24, [#allocation12]  }
  0x76   :  { %1678 = dma.done.wait [#allocation3], 128  }
  0x77   :  { %1679 = vsyncadd [#allocation3], 4294967168 }
  0x78   :  { %1680 = dma.done.wait [#allocation6], 512  }
  0x79   :  { %1681 = vsyncadd [#allocation6], 4294966784 }
  0x7a   :  { %1682 = dma.done.wait [#allocation9], 1024  }
  0x7b   :  { %1683 = vsyncadd [#allocation9], 4294966272 }
  0x7c   :  { %1684 = dma.done.wait [#allocation12], 528  }
  0x7d   :  { %1685 = vsyncadd [#allocation12], 4294966768  ;;  %v1697_v0 = vmov 0.0|0.0   ;;  %vm1698_vm0 = vmmov 0   ;;  %v1699_v1 = vmov 0.0   ;;  %vm146_vm1 = vcmask 261120  }
  0x7e   :  { %1382 = vmatprep.subr.bf16.mxu0 %v1697_v0  ;;  %1290 = vmatprep.mubr.msk.f32.mxu0 %vm1698_vm0, %v1699_v1  ;;  %v220_v2 = vld [vmem:[#allocation10] sm:$0xff]  ;;  %v221_v3 = vld [vmem:[#allocation10 + $0x8] sm:$0xff]  ;;  %v222_v4 = vld [vmem:[#allocation10 + $0x10] sm:$0xff]  ;;  %vm404_vm2 = vcmask 64512   ;;  %vm485_vm4 = vcmask 130048   ;;  %s1702_s25 = smov 104  }
  0x7f   :  { %v1388_v5 = vpack.c.bf16 %v221_v3, %v220_v2  ;;  %v223_v6 = vld [vmem:[#allocation10 + $0x18] sm:$0xff]  ;;  %v131_v7 = vld [vmem:[#allocation5] sm:$0xff]  ;;  %v136_v10 = vld [vmem:[#allocation8 + $0x8] sm:$0xff]  ;;  %s1703_s26 = smov 16   ;;  %s1704_s14 = smov 24   ;;  %vm1105_vm5 = vcmask 195584  }
  0x80   :  { %v1392_v8 = vpack.c.bf16 %v223_v6, %v222_v4  ;;  %1301 = vmatprep.mubr.msk.f32.mxu1 %vm146_vm1, %v131_v7  ;;  %v135_v9 = vld [vmem:[#allocation8] sm:$0xff]  ;;  %v137_v11 = vld [vmem:[#allocation8 + $0x10] sm:$0xff]  ;;  %v138_v13 = vld [vmem:[#allocation8 + $0x18] sm:$0xff]  ;;  %s1705_s17 = smov [#allocation14]  }
  0x81   :  { %1389 = vmatprep.subr.bf16.mxu1 %v1388_v5  ;;  %v1383_v12 = vpack.c.bf16 %v136_v10, %v135_v9  ;;  %v1386_v14 = vpack.c.bf16 %v138_v13, %v137_v11  ;;  %v132_v15 = vld [vmem:[#allocation5 + $0x8] sm:$0xff]  ;;  %v130_v16 = vld [vmem:[#allocation2] sm:$0xff]  ;;  %vm1880_vm3 = vmpackc.low %vm404_vm2, %vm404_vm2  ;;  %s1198_s3 = sshll.u32 %s1705_s17, 4  ;;  %s1199_s3 = int_to_ptr.vmem [resolvable:$true] %s1198_s3 }
  0x82   :  { %1391 = vmatpush3.bf16.msra.mxu1 %v1388_v5  ;;  %v1212_v17 = vld [vmem:[%s2001_s6] ss:$0 sm:$0xff]  ;;  %s1700_s6 = smov 120   ;;  %v312_v29 = vld [vmem:[#allocation11] sm:$0xff]  ;;  %v313_v30 = vld [vmem:[#allocation11 + $0x8] sm:$0xff]  ;;  %s1656_s13 = scalar_lea.vmem %s1199_s3, 128 }
  0x83   :  { %1393 = vmatprep.subr.bf16.mxu1 %v1392_v8  ;;  %1384 = vmatpush3.bf16.msra.mxu0 %v1383_v12  ;;  %v1210_v25 = vld [vmem:[%s1999_s4] ss:$0 sm:$0xff]  ;;  %v314_v31 = vld [vmem:[#allocation11 + $0x10] sm:$0xff]  ;;  %v1396_v32 = vpack.c.bf16 %v313_v30, %v312_v29  ;;  %v1215_v48 = vld [vmem:[#allocation13] ss:$0 sm:$0xff]  ;;  %s1701_s4 = smov 112   ;;  %p1657_p0 = scmp.ne.s32.totalorder %s1199_s3, %s1656_s13 }
  0x84   :  { %1385 = vmatprep.subr.bf16.mxu0 %v1697_v0  ;;  %v315_v33 = vld [vmem:[#allocation11 + $0x18] sm:$0xff]  ;;  %v133_v34 = vld [vmem:[#allocation7] sm:$0xff]  ;;  %p1661_p1 = scmp.lt.s32.totalorder %s1199_s3, %s1199_s3  ;;  %p1662_p2 = scmp.lt.s32.totalorder %s1656_s13, %s1656_s13 }
  0x85   :  { %v1400_v35 = vpack.c.bf16 %v315_v33, %v314_v31  ;;  %v134_v36 = vld [vmem:[#allocation7 + $0x8] sm:$0xff] }
  0x86   :  { %1395 = vmatpush3.bf16.msra.mxu1 %v1392_v8  ;;  %p1663_p3 = por %p1662_p2, %p1661_p1 }
  0x87   :  { %1387 = vmatpush3.bf16.msra.mxu0 %v1386_v14  ;;  %1404 = vmatprep.subr.bf16.mxu1 %v1697_v0 }
  0x88   :  { %1397 = vmatprep.subr.bf16.mxu0 %v1396_v32  ;;  %p1664_p4 = pnand %p1663_p3, %p1657_p0 }
  0x89   :  { %1302 = vmatmul.mubr.msk.f32.vlgmr.msra.gmra.mrb[0].mxu1 %vm146_vm1, %v132_v15 }
  0x8a   :  { %1291 = vmatmul.mubr.msk.f32.vlgmr.msra.gmra.mrb[0].mxu0 %vm146_vm1, %v130_v16  ;;  %1319 = vmatprep.mubr.msk.f32.mxu1 %vm1698_vm0, %v1699_v1 }
  0x8b   :  { %1312 = vmatprep.mubr.msk.f32.mxu0 %vm146_vm1, %v133_v34  ;;  %1399 = vmatpush3.bf16.msra.mxu0 %v1396_v32 }
  0x8c   :  { %1401 = vmatprep.subr.bf16.mxu0 %v1400_v35 }
  0x8f   :  { %1403 = vmatpush3.bf16.msra.mxu0 %v1400_v35 }
  0x90   :  { %1415 = vmatprep.subr.bf16.mxu0 %v1697_v0 }
  0x92   :  { %1313 = vmatmul.mubr.msk.f32.vlgmr.msra.gmra.mrb[2].mxu0 %vm146_vm1, %v134_v36 }
  0x93   :  { %1340 = vmatprep.mubr.msk.f32.mxu0 %vm1698_vm0, %v1699_v1 }
 0x15c   :  { %v1303_v18 = vpop.f32.mrb[0].mxu1 }
 0x15d   :  { %v309_v19 = vadd.f32 %v1303_v18, %v1212_v17  ;;  %v303_v20 = vpop.f32.mrb[1].mxu1  ;;  %v216_v21 = vpop.f32.mrb[0].mxu0 }
 0x15e   :  { %v304_v22 = vadd.f32 %v1212_v17, %v303_v20  ;;  %v1292_v23 = vpop.f32.mrb[1].mxu0  ;;  %v1893_v28 = vadd.f32 %v1210_v25, %v216_v21 }
 0x160   :  { %v1405_v26 = vpack.c.bf16 %v309_v19, %v304_v22  ;;  %v1887_v27 = vpack.i.bf16 %v309_v19, %v304_v22 }
 0x162   :  { %1457 = vrot.lane.b32.xlu1 %v1887_v27, %s1700_s6  ;;  %1407 = vmatpush3.bf16.xpose.msk.msra.mxu1 %vm1880_vm3, %v1405_v26 }
 0x163   :  { %1408 = vmatprep.subr.bf16.mxu1 %v1697_v0 }
 0x165   :  { %v1314_v41 = vpop.f32.mrb[2].mxu0 }
 0x166   :  { %570 = vrot.lane.b32.xlu1 %v1893_v28, %s1700_s6  ;;  %v395_v42 = vpop.f32.mrb[3].mxu0  ;;  %v401_v49 = vadd.f32 %v1314_v41, %v1215_v48 }
 0x167   :  { %v396_v50 = vadd.f32 %v1215_v48, %v395_v42 }
 0x169   :  { %1320 = vmatmul.mubr.msk.f32.vlgmr.msra.gmra.mrb[2].mxu1 %vm404_vm2, %v1893_v28  ;;  %v1409_v51 = vpack.c.bf16 %v401_v49, %v396_v50  ;;  %v1909_v52 = vpack.i.bf16 %v401_v49, %v396_v50 }
 0x16a   :  { %1326 = vmatprep.mubr.msk.f32.mxu1 %vm1698_vm0, %v1699_v1 }
 0x16b   :  { %1410 = vmatpush3.bf16.msra.mxu1 %v1409_v51 }
 0x16c   :  { %1411 = vmatprep.subr.bf16.mxu1 %v1697_v0 }
 0x1d4   :  { %v1458_v54 = vpop.permute.xlu1 %1457 }
 0x1d5   :  { %v1460_v55 = vunpack.i.h.bf16 %v1458_v54  ;;  %v1459_v56 = vunpack.i.l.bf16 %v1458_v54 }
 0x1d7   :  { %v1412_v59 = vpack.c.bf16 %v1460_v55, %v1459_v56 }
 0x1d8   :  { %v571_v60 = vpop.permute.xlu1 %570 }
 0x23c   :  { %v480_v37 = vpop.f32.mrb[2].mxu1 }
 0x23d   :  { %v484_v38 = vmul.f32 0.35355338, %v480_v37  ;;  %v1321_v39 = vpop.f32.mrb[3].mxu1 }
 0x23f   :  { %v486_v40 = vsel %vm485_vm4, %v484_v38, -inf }
 0x240   :  { %487 = vmax.xlane.f32.xlu0 %v486_v40 }
 0x2cd   :  { %v488_v43 = vpop.xlane.xlu0 %487 }
 0x2ce   :  { %v489_v44 = vsub.f32 %v484_v38, %v488_v43 }
 0x2d0   :  { %v490_v45 = vmul.f32 1.442695, %v489_v44 }
 0x2d2   :  { %1486 = vpow2.f32 %v490_v45 }
 0x2dc   :  { %v1487_v46 = vpop.eup %1486 }
 0x2dd   :  { %v492_v47 = vsel %vm485_vm4, %v1487_v46, 0.0 }
 0x2de   :  { %493 = vadd.xlane.f32.xlu0 %v492_v47 }
 0x36b   :  { %v494_v53 = vpop.xlane.xlu0 %493 }
 0x36c   :  { %1488 = vrcp.f32 %v494_v53 }
 0x376   :  { %v1489_v57 = vpop.eup %1488 }
 0x377   :  { %v496_v58 = vmul.f32 %v1489_v57, %v1487_v46 }
 0x379   :  { %1327 = vmatmul.mubr.msk.f32.vlgmr.msra.gmra.mrb[4].mxu1 %vm485_vm4, %v496_v58 }
 0x37a   :  { %1414 = vmatpush3.bf16.xpose.msk.msra.mxu1 %vm1880_vm3, %v1412_v59  ;;  %1333 = vmatprep.mubr.msk.f32.mxu1 %vm1698_vm0, %v1699_v1 }
 0x37b   :  { %1422 = vmatprep.subr.bf16.mxu1 %v1697_v0 }
 0x381   :  { %1334 = vmatmul.mubr.msk.f32.vlgmr.msra.gmra.mrb[6].mxu1 %vm404_vm2, %v571_v60 }
 0x382   :  { %1354 = vmatprep.mubr.msk.f32.mxu1 %vm1698_vm0, %v1699_v1 }
 0x44c   :  { %v1921_v61 = vpop.f32.mrb[4].mxu1 }
 0x44d   :  { %v1328_v62 = vpop.f32.mrb[5].mxu1 }
 0x454   :  { %v648_v63 = vpop.f32.mrb[6].mxu1 }
 0x455   :  { %v652_v2 = vmul.f32 0.35355338, %v648_v63  ;;  %v1335_v3 = vpop.f32.mrb[7].mxu1 }
 0x456   :  { %v1108_v3 = vld [vmem:[%s2004_s9 + $0x8] sm:$0xff] }
 0x457   :  { %v653_v4 = vsel %vm485_vm4, %v652_v2, -inf }
 0x458   :  { %654 = vmax.xlane.f32.xlu0 %v653_v4  ;;  %v1109_v4 = vld [vmem:[%s2004_s9 + $0x10] sm:$0xff] }
 0x46e   :  { %1462 = vrot.lane.b32.xlu0 %v1909_v52, %s1700_s6 }
 0x472   :  { %1467 = vrot.lane.b32.xlu0 %v1887_v27, %s1701_s4 }
 0x476   :  { %745 = vrot.lane.b32.xlu0 %v1893_v28, %s1701_s4 }
 0x4e5   :  { %v655_v5 = vpop.xlane.xlu0 %654 }
 0x4e6   :  { %v656_v6 = vsub.f32 %v652_v2, %v655_v5  ;;  %v1107_v2 = vld [vmem:[%s2004_s9] sm:$0xff] }
 0x4e7   :  { %v1433_v5 = vpack.c.bf16 %v1108_v3, %v1107_v2 }
 0x4e8   :  { %v657_v7 = vmul.f32 1.442695, %v656_v6  ;;  %v1110_v6 = vld [vmem:[%s2004_s9 + $0x18] sm:$0xff] }
 0x4e9   :  { %v1463_v8 = vpop.permute.xlu0 %1462 }
 0x4ea   :  { %1490 = vpow2.f32 %v657_v7  ;;  %v1465_v9 = vunpack.i.h.bf16 %v1463_v8  ;;  %v1464_v10 = vunpack.i.l.bf16 %v1463_v8  ;;  %v1436_v7 = vpack.c.bf16 %v1110_v6, %v1109_v4 }
 0x4ec   :  { %v1416_v11 = vpack.c.bf16 %v1465_v9, %v1464_v10 }
 0x4ed   :  { %v1468_v18 = vpop.permute.xlu0 %1467 }
 0x4ee   :  { %1417 = vmatpush3.bf16.msra.mxu0 %v1416_v11  ;;  %v1470_v20 = vunpack.i.h.bf16 %v1468_v18  ;;  %v1469_v21 = vunpack.i.l.bf16 %v1468_v18 }
 0x4ef   :  { %1418 = vmatprep.subr.bf16.mxu0 %v1697_v0 }
 0x4f0   :  { %v1419_v25 = vpack.c.bf16 %v1470_v20, %v1469_v21 }
 0x4f1   :  { %v746_v26 = vpop.permute.xlu0 %745 }
 0x4f4   :  { %v1491_v12 = vpop.eup %1490 }
 0x4f5   :  { %v659_v13 = vsel %vm485_vm4, %v1491_v12, 0.0 }
 0x4f6   :  { %660 = vadd.xlane.f32.xlu1 %v659_v13 }
 0x507   :  { %1472 = vrot.lane.b32.xlu1 %v1909_v52, %s1701_s4 }
 0x50b   :  { %1477 = vrot.lane.b32.xlu1 %v1887_v27, %s1702_s25 }
 0x583   :  { %v661_v14 = vpop.xlane.xlu1 %660 }
 0x584   :  { %1492 = vrcp.f32 %v661_v14 }
 0x587   :  { %v1473_v15 = vpop.permute.xlu1 %1472 }
 0x588   :  { %v1475_v16 = vunpack.i.h.bf16 %v1473_v15  ;;  %v1474_v17 = vunpack.i.l.bf16 %v1473_v15 }
 0x58a   :  { %v1423_v19 = vpack.c.bf16 %v1475_v16, %v1474_v17 }
 0x58b   :  { %v1478_v39 = vpop.permute.xlu1 %1477 }
 0x58c   :  { %1424 = vmatpush3.bf16.msra.mxu1 %v1423_v19  ;;  %v1480_v41 = vunpack.i.h.bf16 %v1478_v39  ;;  %v1479_v42 = vunpack.i.l.bf16 %v1478_v39 }
 0x58d   :  { %1425 = vmatprep.subr.bf16.mxu1 %v1697_v0 }
 0x58e   :  { %v1493_v22 = vpop.eup %1492  ;;  %v1426_v45 = vpack.c.bf16 %v1480_v41, %v1479_v42 }
 0x58f   :  { %v663_v23 = vmul.f32 %v1493_v22, %v1491_v12 }
 0x591   :  { %1341 = vmatmul.mubr.msk.f32.vlgmr.msra.gmra.mrb[4].mxu0 %vm485_vm4, %v663_v23 }
 0x592   :  { %1421 = vmatpush3.bf16.xpose.msk.msra.mxu0 %vm1880_vm3, %v1419_v25  ;;  %1347 = vmatprep.mubr.msk.f32.mxu0 %vm1698_vm0, %v1699_v1 }
 0x593   :  { %1429 = vmatprep.subr.bf16.mxu0 %v1697_v0 }
 0x599   :  { %1348 = vmatmul.mubr.msk.f32.vlgmr.msra.gmra.mrb[6].mxu0 %vm404_vm2, %v746_v26 }
 0x59a   :  { %1368 = vmatprep.mubr.msk.f32.mxu0 %vm1698_vm0, %v1699_v1 }
 0x664   :  { %v741_v27 = vpop.f32.mrb[4].mxu0 }
 0x665   :  { %v1342_v29 = vpop.f32.mrb[5].mxu0 }
 0x66c   :  { %v823_v30 = vpop.f32.mrb[6].mxu0 }
 0x66d   :  { %v827_v31 = vmul.f32 0.35355338, %v823_v30  ;;  %v1349_v32 = vpop.f32.mrb[7].mxu0 }
 0x66f   :  { %v828_v33 = vsel %vm485_vm4, %v827_v31, -inf }
 0x670   :  { %829 = vmax.xlane.f32.xlu0 %v828_v33 }
 0x6fd   :  { %v830_v34 = vpop.xlane.xlu0 %829 }
 0x6fe   :  { %v831_v35 = vsub.f32 %v827_v31, %v830_v34 }
 0x700   :  { %v832_v36 = vmul.f32 1.442695, %v831_v35 }
 0x702   :  { %1494 = vpow2.f32 %v832_v36 }
 0x70c   :  { %v1495_v37 = vpop.eup %1494 }
 0x70d   :  { %v834_v38 = vsel %vm485_vm4, %v1495_v37, 0.0 }
 0x70e   :  { %835 = vadd.xlane.f32.xlu1 %v834_v38 }
 0x71f   :  { %918 = vrot.lane.b32.xlu1 %v1893_v28, %s1702_s25 }
 0x79b   :  { %v836_v40 = vpop.xlane.xlu1 %835 }
 0x79c   :  { %1496 = vrcp.f32 %v836_v40 }
 0x79f   :  { %v919_v46 = vpop.permute.xlu1 %918 }
 0x7a6   :  { %v1497_v43 = vpop.eup %1496 }
 0x7a7   :  { %v838_v44 = vmul.f32 %v1497_v43, %v1495_v37 }
 0x7a9   :  { %1355 = vmatmul.mubr.msk.f32.vlgmr.msra.gmra.mrb[8].mxu1 %vm485_vm4, %v838_v44 }
 0x7aa   :  { %1428 = vmatpush3.bf16.xpose.msk.msra.mxu1 %vm1880_vm3, %v1426_v45  ;;  %1361 = vmatprep.mubr.msk.f32.mxu1 %vm1698_vm0, %v1699_v1 }
 0x7b1   :  { %1362 = vmatmul.mubr.msk.f32.vlgmr.msra.gmra.mrb[10].mxu1 %vm404_vm2, %v919_v46 }
 0x87c   :  { %v914_v28 = vpop.f32.mrb[8].mxu1 }
 0x87d   :  { %v1356_v47 = vpop.f32.mrb[9].mxu1 }
 0x884   :  { %v996_v48 = vpop.f32.mrb[10].mxu1 }
 0x885   :  { %v1000_v49 = vmul.f32 0.35355338, %v996_v48  ;;  %v1363_v50 = vpop.f32.mrb[11].mxu1 }
 0x887   :  { %v1001_v51 = vsel %vm485_vm4, %v1000_v49, -inf }
 0x888   :  { %1002 = vmax.xlane.f32.xlu0 %v1001_v51 }
 0x89e   :  { %1482 = vrot.lane.b32.xlu0 %v1909_v52, %s1702_s25 }
 0x8a2   :  { %1092 = vrot.lane.b32.xlu0 %v741_v27, %s1690_s28 }
 0x8a6   :  { %1096 = vrot.lane.b32.xlu0 %v914_v28, %s1703_s26 }
 0x915   :  { %v1003_v24 = vpop.xlane.xlu0 %1002 }
 0x916   :  { %v1004_v53 = vsub.f32 %v1000_v49, %v1003_v24 }
 0x918   :  { %v1005_v54 = vmul.f32 1.442695, %v1004_v53 }
 0x919   :  { %v1483_v55 = vpop.permute.xlu0 %1482 }
 0x91a   :  { %1498 = vpow2.f32 %v1005_v54  ;;  %v1485_v56 = vunpack.i.h.bf16 %v1483_v55  ;;  %v1484_v57 = vunpack.i.l.bf16 %v1483_v55 }
 0x91c   :  { %v1430_v58 = vpack.c.bf16 %v1485_v56, %v1484_v57 }
 0x91d   :  { %v1093_v9 = vpop.permute.xlu0 %1092 }
 0x91e   :  { %1431 = vmatpush3.bf16.msra.mxu0 %v1430_v58  ;;  %v1103_v11 = vsel %vm404_vm2, %v1921_v61, %v1093_v9 }
 0x91f   :  { %1432 = vmatprep.subr.bf16.mxu0 %v1697_v0 }
 0x921   :  { %v1097_v10 = vpop.permute.xlu0 %1096 }
 0x922   :  { %v1104_v12 = vsel %vm485_vm4, %v1103_v11, %v1097_v10 }
 0x924   :  { %v1499_v59 = vpop.eup %1498 }
 0x925   :  { %v1007_v60 = vsel %vm485_vm4, %v1499_v59, 0.0 }
 0x926   :  { %1008 = vadd.xlane.f32.xlu1 %v1007_v60 }
 0x9b3   :  { %v1009_v52 = vpop.xlane.xlu1 %1008 }
 0x9b4   :  { %1500 = vrcp.f32 %v1009_v52 }
 0x9be   :  { %v1501_v62 = vpop.eup %1500 }
 0x9bf   :  { %v1011_v63 = vmul.f32 %v1501_v62, %v1499_v59 }
 0x9c1   :  { %1369 = vmatmul.mubr.msk.f32.vlgmr.msra.gmra.mrb[8].mxu0 %vm485_vm4, %v1011_v63 }
 0x9c2   :  { %1379 = vmatprep.mubr.msk.f32.mxu0 %vm1698_vm0, %v1699_v1  ;;  %1434 = vmatpush3.bf16.msra.mxu0 %v1433_v5 }
 0x9c3   :  { %1435 = vmatprep.subr.bf16.mxu0 %v1697_v0  ;;  %v1234_v0 = vld [vmem:[%s2005_s10] ss:$0 sm:$0xff] }
 0x9c6   :  { %1437 = vmatpush3.bf16.msra.mxu0 %v1436_v7 }
 0xa94   :  { %v1087_v1 = vpop.f32.mrb[8].mxu0 }
 0xa95   :  { %1100 = vrot.lane.b32.xlu0 %v1087_v1, %s1704_s14  ;;  %v1370_v8 = vpop.f32.mrb[9].mxu0 }
 0xb07   :  { %v1101_v13 = vpop.permute.xlu0 %1100 }
 0xb08   :  { %v1106_v14 = vsel %vm1105_vm5, %v1104_v12, %v1101_v13 }
 0xb09   :  { %1380 = vmatmul.mubr.msk.f32.vlgmr.msra.gmra.mrb[10].mxu0 %vm146_vm1, %v1106_v14 }
 0xbdc   :  { %v1187_v15 = vpop.f32.mrb[10].mxu0 }
 0xbdd   :  { %v1188_v16 = vadd.f32 %v1234_v0, %v1187_v15  ;;  %v1381_v17 = vpop.f32.mrb[11].mxu0 }
 0xbdf   :  { %1191 = vst.msk [vmem:[#allocation14] sm:$0xff] %vm146_vm1, %v1188_v16 }
 0xbe0   :  { %1667 = shalt.err (!%p1664_p4)
}
 0xbe1   :  { %s1668_s0 = scalar_lea.hbm %s2006_s11, 128 }
 0xbe2   :  { %p1669_p5 = scmp.ne.s32.totalorder %s2006_s11, %s1668_s0  ;;  %p1672_p6 = scmp.lt.u32.totalorder %s1668_s0, %s2006_s11 }
 0xbe4   :  { %p1674_p7 = pnand %p1672_p6, %p1669_p5 }
 0xbe6   :  { %1677 = shalt.err (!%p1674_p7)
}
 0xbe7   :  { %1201 = dma.vmem_to_hbm [thread:$0]  %s1199_s3, 128, %s2006_s11, [#allocation4]  }
 0xbe8   :  { %1686 = dma.done.wait [#allocation4], 128  }
 0xbe9   :  { %1687 = vsyncadd [#allocation4], 4294967168 }
 0xbea   :  { %1205 = vsyncpa [#allocation3], 1 }
 0xbeb   :  { %1206 = vsyncpa [#allocation6], 1 }
 0xbec   :  { %1207 = vsyncpa [#allocation9], 1 }
 0xbed   :  { %1208 = vsyncpa [#allocation12], 1 }
 0xbee   :  { %1209 = vsyncpa [#allocation4], 1 }

</bundles_post_ra>
